<compile_context>
chip_gen: v7x
topology: tpu7x:2x2x1
jax: 0.10.0
libtpu: 0.0.40
codegen_flags: <defaults>
</compile_context>

<pallas_src>
import functools

import jax
import jax.numpy as jnp
from jax.experimental import pallas as pl
from jax.experimental.pallas import tpu as pltpu

_EPS = 1e-5


def _bn_act_kernel(x_ref, scale_ref, bias_ref, o_ref, *, apply_relu):
    # y = x * scale + bias, optional ReLU.  scale/bias are (tr, 1) and
    # broadcast along the lane axis against the (tr, tl) data block.
    x = x_ref[...].astype(jnp.float32)
    y = x * scale_ref[...] + bias_ref[...]
    if apply_relu:
        y = jnp.maximum(y, 0.0)
    o_ref[...] = y.astype(o_ref.dtype)


def _round_up(x, m):
    return ((x + m - 1) // m) * m


def bn_act(x_nchw, gamma, beta, running_mean, running_var,
           act_type="relu", eps=_EPS):
    """x_nchw: (N, C, H, W).  Inference-mode BatchNorm2d + optional ReLU."""
    N, C, H, W = x_nchw.shape
    out_dtype = x_nchw.dtype
    f32 = jnp.float32

    # Fold BN (running-stats inference semantics) into per-channel scale/bias.
    scale_c = gamma.astype(f32) * jax.lax.rsqrt(running_var.astype(f32) + eps)
    bias_c = beta.astype(f32) - running_mean.astype(f32) * scale_c

    R = N * C          # rows: one row per (sample, channel)
    L = H * W          # lanes: spatial extent
    x2d = x_nchw.reshape(R, L)

    # Per-row params (tiny: N*C floats each), row r = n*C + c -> channel c.
    scale_r = jnp.tile(scale_c, N).reshape(R, 1)
    bias_r = jnp.tile(bias_c, N).reshape(R, 1)

    # ---- tile selection: lane-dense, multi-MiB blocks, VMEM-safe ----------
    LANE, SUB = 128, 8
    block_budget_bytes = 4 * 1024 * 1024  # per data block (f32); 2x(in+out)
                                          # double-buffered stays < 32 MiB

    L_pad = _round_up(L, LANE)
    # Whole (padded) row on the lane axis if modest, else 2048-wide stripes.
    tl = L_pad if L_pad <= 4096 else 2048
    L_pad = _round_up(L_pad, tl)

    bytes_per_row = tl * 4
    tr = max(SUB, (block_budget_bytes // bytes_per_row) // SUB * SUB)
    R_pad = _round_up(R, SUB)
    tr = min(tr, R_pad)
    R_pad = _round_up(R_pad, tr)

    # Zero-pad to tile multiples; padded rows/cols are sliced away below.
    if (R_pad, L_pad) != (R, L):
        x2d = jnp.pad(x2d, ((0, R_pad - R), (0, L_pad - L)))
        scale_r = jnp.pad(scale_r, ((0, R_pad - R), (0, 0)))
        bias_r = jnp.pad(bias_r, ((0, R_pad - R), (0, 0)))

    grid = (R_pad // tr, L_pad // tl)

    x_spec = pl.BlockSpec((tr, tl), lambda i, j: (i, j))
    par_spec = pl.BlockSpec((tr, 1), lambda i, j: (i, 0))

    kernel = functools.partial(_bn_act_kernel, apply_relu=(act_type == "relu"))

    out2d = pl.pallas_call(
        kernel,
        out_shape=jax.ShapeDtypeStruct((R_pad, L_pad), out_dtype),
        grid_spec=pltpu.PrefetchScalarGridSpec(
            num_scalar_prefetch=0,
            grid=grid,
            in_specs=[x_spec, par_spec, par_spec],
            out_specs=x_spec,
        ),
        compiler_params=pltpu.CompilerParams(
            dimension_semantics=("parallel", "parallel"),
            vmem_limit_bytes=32 * 1024 * 1024,
        ),
    )(x2d, scale_r, bias_r)

    return out2d[:R, :L].reshape(N, C, H, W)


if __name__ == "__main__":
    N, C, H, W = 2, 4, 16, 16
    key = jax.random.PRNGKey(0)
    kx, kg, kb, km, kv = jax.random.split(key, 5)

    x = jax.random.normal(kx, (N, C, H, W), dtype=jnp.float32)
    # Deterministic, non-trivial BN parameters (shapes from nn.BatchNorm2d(C)).
    gamma = 1.0 + 0.1 * jax.random.normal(kg, (C,), dtype=jnp.float32)
    beta = 0.1 * jax.random.normal(kb, (C,), dtype=jnp.float32)
    running_mean = 0.1 * jax.random.normal(km, (C,), dtype=jnp.float32)
    running_var = jnp.abs(1.0 + 0.1 * jax.random.normal(kv, (C,), dtype=jnp.float32))

    out = bn_act(x, gamma, beta, running_mean, running_var, act_type="relu")
    out = jax.block_until_ready(out)

    # Plain-JAX reference (inference-mode BatchNorm2d + ReLU).
    scale = gamma / jnp.sqrt(running_var + _EPS)
    bias = beta - running_mean * scale
    ref = x * scale[None, :, None, None] + bias[None, :, None, None]
    ref = jnp.maximum(ref, 0.0)

    assert out.shape == (N, C, H, W)
    assert out.dtype == x.dtype
    assert jnp.allclose(out, ref, atol=1e-5, rtol=1e-5)

    print("KERNEL_OK")
</pallas_src>

<mosaic_0001>
module attributes {stable_mosaic.version = 11 : i64} {
  func.func @_bn_act_kernel(%arg0: i32, %arg1: i32, %arg2: memref<8x256xf32, #tpu.memory_space<vmem>>, %arg3: memref<8x1xf32, #tpu.memory_space<vmem>>, %arg4: memref<8x1xf32, #tpu.memory_space<vmem>>, %arg5: memref<8x256xf32, #tpu.memory_space<vmem>>) attributes {dimension_semantics = [#tpu.dimension_semantics<parallel>, #tpu.dimension_semantics<parallel>], iteration_bounds = array<i64: 1, 1>, scalar_prefetch = 0 : i64, scratch_operands = 0 : i64, tpu.core_type = #tpu.core_type<tc>, window_params = [{transform_indices = @transform_0, window_bounds = array<i64: 8, 256>}, {transform_indices = @transform_1, window_bounds = array<i64: 8, 1>}, {transform_indices = @transform_2, window_bounds = array<i64: 8, 1>}, {transform_indices = @transform_3, window_bounds = array<i64: 8, 256>}]} {
    %c0 = arith.constant 0 : index
    %c0_0 = arith.constant 0 : index
    %0 = vector.load %arg2[%c0, %c0_0] : memref<8x256xf32, #tpu.memory_space<vmem>>, vector<8x256xf32>
    %c0_1 = arith.constant 0 : index
    %c0_2 = arith.constant 0 : index
    %1 = vector.load %arg3[%c0_1, %c0_2] : memref<8x1xf32, #tpu.memory_space<vmem>>, vector<8x1xf32>
    %2 = vector.broadcast %1 : vector<8x1xf32> to vector<8x256xf32>
    %3 = arith.mulf %0, %2 : vector<8x256xf32>
    %c0_3 = arith.constant 0 : index
    %c0_4 = arith.constant 0 : index
    %4 = vector.load %arg4[%c0_3, %c0_4] : memref<8x1xf32, #tpu.memory_space<vmem>>, vector<8x1xf32>
    %5 = vector.broadcast %4 : vector<8x1xf32> to vector<8x256xf32>
    %6 = arith.addf %3, %5 : vector<8x256xf32>
    %cst = arith.constant 0.000000e+00 : f32
    %7 = vector.broadcast %cst : f32 to vector<8x256xf32>
    %8 = arith.maximumf %6, %7 : vector<8x256xf32>
    %c0_5 = arith.constant 0 : index
    %c0_6 = arith.constant 0 : index
    %9 = vector.load %arg5[%c0_5, %c0_6] : memref<8x256xf32, #tpu.memory_space<vmem>>, vector<8x256xf32>
    tpu.vector_store %arg5[%c0_5, %c0_6], %8 {strides = array<i32>} : memref<8x256xf32, #tpu.memory_space<vmem>>, vector<8x256xf32>,
    return
  }
  func.func @transform_0(%arg0: i32, %arg1: i32) -> (i32, i32) {
    %c0_i32 = arith.constant 0 : i32
    return %arg0, %arg1 : i32, i32
  }
  func.func @transform_1(%arg0: i32, %arg1: i32) -> (i32, i32) {
    %c0_i32 = arith.constant 0 : i32
    %c0_i32_0 = arith.constant 0 : i32
    return %arg0, %c0_i32 : i32, i32
  }
  func.func @transform_2(%arg0: i32, %arg1: i32) -> (i32, i32) {
    %c0_i32 = arith.constant 0 : i32
    %c0_i32_0 = arith.constant 0 : i32
    return %arg0, %c0_i32 : i32, i32
  }
  func.func @transform_3(%arg0: i32, %arg1: i32) -> (i32, i32) {
    %c0_i32 = arith.constant 0 : i32
    return %arg0, %arg1 : i32, i32
  }
}

</mosaic_0001>

<bundles_post_ra>
// kernel: tpu_custom_call.1
= control target key start
LH: loop header
LB: loop body
LE: loop exit
PB: predicated region body
PF: predicated region fallthrough
CT: control target
= control target key end

     0   :  { %s124_s0 = inlined_call_operand.vmem [shape: f32[8,256], index: 0, kind: input, shape index: {}]   ;;  %s125_s1 = inlined_call_operand.vmem [shape: f32[8,1], index: 1, kind: input, shape index: {}]   ;;  %s126_s2 = inlined_call_operand.vmem [shape: f32[8,1], index: 2, kind: input, shape index: {}]   ;;  %s127_s3 = inlined_call_operand.hbm [shape: f32[8,256], index: 3, kind: output, shape index: {}]  }
   0x1   :  { %v17_v0 = vld [vmem:[%s125_s1] sm:$0xff] }
   0x2   :  { %8 = vsyncpa [#allocation3], 0  ;;  %v78_v1 = vmov 0   ;;  %v25_v2 = vld [vmem:[%s126_s2] sm:$0xff]  ;;  %v16_v5 = vld [vmem:[%s124_s0 + $0x8] sm:$0xff]  ;;  %s79_s1 = smov [#allocation2]  }
   0x3   :  { %53 = vset.pattern.permute.xlu0 %v78_v1  ;;  %v15_v4 = vld [vmem:[%s124_s0] sm:$0xff]  ;;  %s43_s20 = sshll.u32 %s79_s1, 4  ;;  %s44_s20 = int_to_ptr.vmem [resolvable:$true] %s43_s20 }
   0x4   :  { %20 = vperm.xlu0 %53, %v17_v0   ;;  %s54_s2 = scalar_lea.vmem %s44_s20, 256  ;;  %p59_p1 = scmp.lt.s32.totalorder %s44_s20, %s44_s20 }
   0x5   :  { %p55_p0 = scmp.ne.s32.totalorder %s44_s20, %s54_s2  ;;  %p60_p2 = scmp.lt.s32.totalorder %s54_s2, %s54_s2 }
   0x7   :  { %p61_p3 = por %p60_p2, %p59_p1 }
   0x8   :  { %28 = vperm.xlu0 %53, %v25_v2  }
   0x9   :  { %p62_p4 = pnand %p61_p3, %p55_p0 }
  0x83   :  { %v21_v3 = vpop.permute.xlu0 %20 }
  0x84   :  { %v23_v6 = vmul.f32 %v21_v3, %v15_v4  ;;  %v24_v7 = vmul.f32 %v21_v3, %v16_v5 }
  0x87   :  { %v29_v8 = vpop.permute.xlu0 %28 }
  0x88   :  { %v31_v9 = vadd.f32 %v29_v8, %v23_v6  ;;  %v32_v10 = vadd.f32 %v29_v8, %v24_v7 }
  0x8a   :  { %v33_v11 = vmax.f32 %v31_v9, 0.0  ;;  %v34_v12 = vmax.f32 %v32_v10, 0.0 }
  0x8c   :  { %35 = vst [vmem:[#allocation2] sm:$0xff] %v33_v11  ;;  %36 = vst [vmem:[#allocation2 + $0x8] sm:$0xff] %v34_v12 }
  0x8d   :  { %65 = shalt.err (!%p62_p4)
}
  0x8e   :  { %s66_s22 = scalar_lea.hbm %s127_s3, 256 }
  0x8f   :  { %p67_p5 = scmp.ne.s32.totalorder %s127_s3, %s66_s22  ;;  %p70_p6 = scmp.lt.u32.totalorder %s66_s22, %s127_s3 }
  0x91   :  { %p72_p7 = pnand %p70_p6, %p67_p5 }
  0x93   :  { %75 = shalt.err (!%p72_p7)
}
  0x94   :  { %46 = dma.vmem_to_hbm [thread:$0]  %s44_s20, 256, %s127_s3, [#allocation3]  }
  0x95   :  { %76 = dma.done.wait [#allocation3], 256  }
  0x96   :  { %77 = vsyncadd [#allocation3], 4294967040 }
  0x97   :  { %50 = vsyncpa [#allocation3], 1 }

</bundles_post_ra>
